<compile_context>
chip_gen: v7x
topology: tpu7x:2x2x1
jax: 0.10.0
libtpu: 0.0.40
codegen_flags: <defaults>
</compile_context>

<pallas_src>
import jax
import jax.numpy as jnp
from jax.experimental import pallas as pl
from jax.experimental.pallas import tpu as pltpu


def se_kernel(x_ref, w1t_ref, b1_ref, w2_ref, b2_ref, o_ref):
    """One grid step = TB batch elements.

    x_ref  : (TB, C, HW)  input activations (channels on sublanes, HW on lanes)
    w1t_ref: (C, MID)     folded (conv1 + BN) weight, transposed
    b1_ref : (1, MID)     folded (conv1 + BN) bias
    w2_ref : (C, MID)     conv2 weight (natural nn.Conv2d layout, squeezed)
    b2_ref : (C, 1)       conv2 bias
    o_ref  : (TB, C, HW)  output
    """
    inv_hw = 1.0 / x_ref.shape[-1]                       # trace-time constant

    x = x_ref[...]                                       # (TB, C, HW), input dtype

    # Global average pool over spatial positions (lane-axis reduce on XLU),
    # accumulated in f32 without materializing a full-tile f32 copy of x.
    pooled = jnp.sum(x.astype(jnp.float32), axis=-1, keepdims=True) * inv_hw  # (TB, C, 1)

    # Squeeze: folded conv1+BN as broadcast-multiply + sublane reduce (no MXU).
    h = jnp.sum(w1t_ref[...][None, :, :] * pooled, axis=1, keepdims=True)
    h = jnp.maximum(h + b1_ref[...][None, :, :], 0.0)                 # (TB, 1, MID)

    # Excite: conv2 as broadcast-multiply + lane reduce, then sigmoid (EUP).
    y = jnp.sum(w2_ref[...][None, :, :] * h, axis=-1, keepdims=True)
    y = jax.nn.sigmoid(y + b2_ref[...][None, :, :])                   # (TB, C, 1) f32

    # Channel-wise rescale; lane-dense store (last dim = HW).
    if x.dtype == jnp.float32:
        o_ref[...] = x * y                       # exact f32 path (and v5e-safe)
    else:
        # bf16/fp8 path: multiply in input dtype (halves VALU traffic, no f32 tile).
        o_ref[...] = (x * y.astype(x.dtype)).astype(o_ref.dtype)


def _vmem_capacity_bytes():
    """Per-generation VMEM capacity; conservative v7x fallback if unavailable."""
    try:
        info = pltpu.get_tpu_info()
        cap = getattr(info, "vmem_capacity_bytes", None)
        if cap:
            return int(cap)
    except Exception:
        pass
    return 64 << 20   # v7x has the smallest VMEM (64 MiB physical)


def _pick_batch_tile(n, per_batch_vmem_bytes, weight_bytes, vmem_target_bytes,
                     min_steps=4):
    """Largest divisor TB of n such that
         (a) the grid keeps at least min(n, min_steps) steps (pipeline overlap
             + megacore sharding on v7x), and
         (b) the *full* pipeline footprint (2 in-bufs + 2 out-bufs + f32 temp
             margin, all counted in per_batch_vmem_bytes) fits the VMEM target.
    Falls back to TB=1 (always valid for (a); tiny tiles are a perf hazard
    only, never a correctness one)."""
    min_steps = min(n, min_steps)
    budget = max(vmem_target_bytes - weight_bytes, per_batch_vmem_bytes)
    best = 1
    for d in range(1, n + 1):
        if n % d:
            continue
        if n // d < min_steps:
            continue
        if d * per_batch_vmem_bytes <= budget:
            best = max(best, d)
    return best


def se_pallas(x_nchw, w1, b1, bn_gamma, bn_beta, bn_mean, bn_var, w2, b2,
              eps=1e-5):
    """x_nchw: (N, C, H, W).  Weights match nn.Conv2d(k=1) / nn.BatchNorm2d:
       w1: (MID, C, 1, 1), b1: (MID,), w2: (C, MID, 1, 1), b2: (C,)."""
    N, C, H, W = x_nchw.shape
    MID = w1.shape[0]
    HW = H * W
    dtype = x_nchw.dtype
    itemsize = jnp.dtype(dtype).itemsize

    # ---- fold BN (inference semantics) into conv1 ----
    inv_std = 1.0 / jnp.sqrt(bn_var.astype(jnp.float32) + eps)
    scale = bn_gamma.astype(jnp.float32) * inv_std               # (MID,)
    w1_2d = w1.reshape(MID, C).astype(jnp.float32)               # (MID, C)
    w1t = (w1_2d * scale[:, None]).T                             # (C, MID)
    b1_eff = ((b1.astype(jnp.float32) - bn_mean.astype(jnp.float32)) * scale
              + bn_beta.astype(jnp.float32)).reshape(1, MID)     # (1, MID)
    w2_2d = w2.reshape(C, MID).astype(jnp.float32)               # (C, MID)
    b2_col = b2.astype(jnp.float32).reshape(C, 1)                # (C, 1)

    # ---- NCHW -> (N, C, HW): free metadata reshape, no transpose ----
    x = x_nchw.reshape(N, C, HW)
    # TODO(synk): for sub-32-bit dtypes with C not a multiple of the sublane
    # packing factor, present the block as (TB*C, HW) 2-D to avoid per-slab
    # sublane padding; irrelevant for the f32 test case here.

    # ---- VMEM accounting: 2 double-buffered input tiles + 2 double-buffered
    #      output tiles (input dtype) + one f32-tile margin for temporaries ----
    per_batch_vmem = C * HW * (4 * itemsize + 4)
    weight_bytes = 2 * C * MID * 4 + MID * 4 + C * 4

    vmem_capacity = _vmem_capacity_bytes()
    # ~21 MiB target on v7x (64 MiB), ~42 MiB on v5e/v6e (128 MiB).
    vmem_target = max(4 << 20, vmem_capacity // 3)

    TB = _pick_batch_tile(N, per_batch_vmem, weight_bytes, vmem_target,
                          min_steps=4)
    grid = (N // TB,)

    # Explicit scoped-VMEM limit so the raised tile budget never trips the
    # default (16 MiB on v5e); keep well under physical capacity.
    vmem_needed = TB * per_batch_vmem + weight_bytes + (2 << 20)
    vmem_limit = int(min(vmem_capacity - (8 << 20),
                         max(vmem_needed, 32 << 20)))

    cost = pl.CostEstimate(
        flops=3 * N * C * HW + 4 * N * C * MID,
        transcendentals=N * C,
        bytes_accessed=2 * N * C * HW * itemsize + 2 * C * MID * 4,
    )

    out = pl.pallas_call(
        se_kernel,
        out_shape=jax.ShapeDtypeStruct((N, C, HW), dtype),
        grid_spec=pltpu.PrefetchScalarGridSpec(
            num_scalar_prefetch=0,
            grid=grid,
            in_specs=[
                pl.BlockSpec((TB, C, HW), lambda n: (n, 0, 0)),
                pl.BlockSpec((C, MID), lambda n: (0, 0)),
                pl.BlockSpec((1, MID), lambda n: (0, 0)),
                pl.BlockSpec((C, MID), lambda n: (0, 0)),
                pl.BlockSpec((C, 1), lambda n: (0, 0)),
            ],
            out_specs=pl.BlockSpec((TB, C, HW), lambda n: (n, 0, 0)),
        ),
        compiler_params=pltpu.CompilerParams(
            dimension_semantics=("parallel",),   # batch steps independent -> v7x megacore
            vmem_limit_bytes=vmem_limit,
        ),
        cost_estimate=cost,
    )(x, w1t, b1_eff, w2_2d, b2_col)

    # ---- (N, C, HW) -> NCHW: free metadata reshape ----
    return out.reshape(N, C, H, W)


def se_reference(x_nchw, w1, b1, bn_gamma, bn_beta, bn_mean, bn_var, w2, b2, eps=1e-5):
    """Pure-JAX reference matching the PyTorch forward (BN in eval mode)."""
    N, C, H, W = x_nchw.shape
    MID = w1.shape[0]
    y = jnp.mean(x_nchw.astype(jnp.float32), axis=(2, 3))        # (N, C)
    y = y @ w1.reshape(MID, C).T + b1                            # (N, MID)
    y = (y - bn_mean) / jnp.sqrt(bn_var + eps) * bn_gamma + bn_beta
    y = jnp.maximum(y, 0.0)
    y = y @ w2.reshape(C, MID).T + b2                            # (N, C)
    y = jax.nn.sigmoid(y)
    return (x_nchw.astype(jnp.float32) * y[:, :, None, None]).astype(x_nchw.dtype)


if __name__ == "__main__":
    # SE(in_channels=24, channels=24, se_ratio=12) -> squeeze dim = 2
    N, C, H, W = 2, 24, 16, 16
    SE_RATIO = 12
    MID = C // SE_RATIO

    key = jax.random.PRNGKey(0)
    ks = jax.random.split(key, 8)
    x = jax.random.normal(ks[0], (N, C, H, W), jnp.float32)

    # Deterministic synthetic parameters (nn.Conv2d / nn.BatchNorm2d shapes)
    w1 = jax.random.normal(ks[1], (MID, C, 1, 1), jnp.float32) * 0.2
    b1 = jax.random.normal(ks[2], (MID,), jnp.float32) * 0.1
    bn_gamma = 1.0 + 0.1 * jax.random.normal(ks[3], (MID,), jnp.float32)
    bn_beta = 0.1 * jax.random.normal(ks[4], (MID,), jnp.float32)
    bn_mean = 0.1 * jax.random.normal(ks[5], (MID,), jnp.float32)
    bn_var = jax.random.uniform(ks[6], (MID,), jnp.float32, 0.5, 1.5)
    w2 = jax.random.normal(ks[7], (C, MID, 1, 1), jnp.float32) * 0.2
    b2 = jnp.linspace(-0.1, 0.1, C, dtype=jnp.float32)

    out = se_pallas(x, w1, b1, bn_gamma, bn_beta, bn_mean, bn_var, w2, b2)
    out = jax.block_until_ready(out)

    ref = se_reference(x, w1, b1, bn_gamma, bn_beta, bn_mean, bn_var, w2, b2)
    assert out.shape == (N, C, H, W)
    assert jnp.allclose(out, ref, atol=1e-5, rtol=1e-5), "mismatch vs reference"

    print("KERNEL_OK")
</pallas_src>

<mosaic_0001>
module attributes {stable_mosaic.version = 11 : i64} {
  func.func @se_kernel(%arg0: i32, %arg1: memref<1x24x256xf32, #tpu.memory_space<vmem>>, %arg2: memref<24x2xf32, #tpu.memory_space<vmem>>, %arg3: memref<1x2xf32, #tpu.memory_space<vmem>>, %arg4: memref<24x2xf32, #tpu.memory_space<vmem>>, %arg5: memref<24x1xf32, #tpu.memory_space<vmem>>, %arg6: memref<1x24x256xf32, #tpu.memory_space<vmem>>) attributes {dimension_semantics = [#tpu.dimension_semantics<parallel>], iteration_bounds = array<i64: 2>, scalar_prefetch = 0 : i64, scratch_operands = 0 : i64, tpu.core_type = #tpu.core_type<tc>, window_params = [{transform_indices = @transform_0, window_bounds = array<i64: 1, 24, 256>}, {pipeline_mode = #tpu.pipeline_mode<synchronous>, transform_indices = @transform_1, window_bounds = array<i64: 24, 2>}, {pipeline_mode = #tpu.pipeline_mode<synchronous>, transform_indices = @transform_2, window_bounds = array<i64: 1, 2>}, {pipeline_mode = #tpu.pipeline_mode<synchronous>, transform_indices = @transform_3, window_bounds = array<i64: 24, 2>}, {pipeline_mode = #tpu.pipeline_mode<synchronous>, transform_indices = @transform_4, window_bounds = array<i64: 24, 1>}, {transform_indices = @transform_5, window_bounds = array<i64: 1, 24, 256>}]} {
    %c0 = arith.constant 0 : index
    %c0_0 = arith.constant 0 : index
    %c0_1 = arith.constant 0 : index
    %0 = vector.load %arg1[%c0, %c0_0, %c0_1] : memref<1x24x256xf32, #tpu.memory_space<vmem>>, vector<1x24x256xf32>
    %cst = arith.constant dense<0.000000e+00> : vector<1x24xf32>
    %1 = vector.multi_reduction <add>, %0, %cst [2] : vector<1x24x256xf32> to vector<1x24xf32>
    %2 = vector.shape_cast %1 : vector<1x24xf32> to vector<1x24x1xf32>
    %cst_2 = arith.constant 3.906250e-03 : f32
    %3 = vector.broadcast %cst_2 : f32 to vector<1x24x1xf32>
    %4 = arith.mulf %2, %3 : vector<1x24x1xf32>
    %c0_3 = arith.constant 0 : index
    %c0_4 = arith.constant 0 : index
    %5 = vector.load %arg2[%c0_3, %c0_4] : memref<24x2xf32, #tpu.memory_space<vmem>>, vector<24x2xf32>
    %6 = vector.shape_cast %5 : vector<24x2xf32> to vector<1x24x2xf32>
    %7 = vector.broadcast %4 : vector<1x24x1xf32> to vector<1x24x2xf32>
    %8 = arith.mulf %6, %7 : vector<1x24x2xf32>
    %cst_5 = arith.constant dense<0.000000e+00> : vector<1x2xf32>
    %9 = vector.multi_reduction <add>, %8, %cst_5 [1] : vector<1x24x2xf32> to vector<1x2xf32>
    %10 = vector.shape_cast %9 : vector<1x2xf32> to vector<1x1x2xf32>
    %c0_6 = arith.constant 0 : index
    %c0_7 = arith.constant 0 : index
    %11 = vector.load %arg3[%c0_6, %c0_7] : memref<1x2xf32, #tpu.memory_space<vmem>>, vector<1x2xf32>
    %12 = vector.shape_cast %11 : vector<1x2xf32> to vector<1x1x2xf32>
    %13 = arith.addf %10, %12 : vector<1x1x2xf32>
    %cst_8 = arith.constant 0.000000e+00 : f32
    %14 = vector.broadcast %cst_8 : f32 to vector<1x1x2xf32>
    %15 = arith.maximumf %13, %14 : vector<1x1x2xf32>
    %c0_9 = arith.constant 0 : index
    %c0_10 = arith.constant 0 : index
    %16 = vector.load %arg4[%c0_9, %c0_10] : memref<24x2xf32, #tpu.memory_space<vmem>>, vector<24x2xf32>
    %17 = vector.shape_cast %16 : vector<24x2xf32> to vector<1x24x2xf32>
    %18 = vector.broadcast %15 : vector<1x1x2xf32> to vector<1x24x2xf32>
    %19 = arith.mulf %17, %18 : vector<1x24x2xf32>
    %cst_11 = arith.constant dense<0.000000e+00> : vector<1x24xf32>
    %20 = vector.multi_reduction <add>, %19, %cst_11 [2] : vector<1x24x2xf32> to vector<1x24xf32>
    %21 = vector.shape_cast %20 : vector<1x24xf32> to vector<1x24x1xf32>
    %c0_12 = arith.constant 0 : index
    %c0_13 = arith.constant 0 : index
    %22 = vector.load %arg5[%c0_12, %c0_13] : memref<24x1xf32, #tpu.memory_space<vmem>>, vector<24x1xf32>
    %23 = vector.shape_cast %22 : vector<24x1xf32> to vector<1x24x1xf32>
    %24 = arith.addf %21, %23 : vector<1x24x1xf32>
    %25 = arith.negf %24 : vector<1x24x1xf32>
    %26 = math.exp %25 : vector<1x24x1xf32>
    %cst_14 = arith.constant 1.000000e+00 : f32
    %27 = vector.broadcast %cst_14 : f32 to vector<1x24x1xf32>
    %28 = arith.addf %27, %26 : vector<1x24x1xf32>
    %29 = arith.divf %27, %28 : vector<1x24x1xf32>
    %30 = vector.broadcast %29 : vector<1x24x1xf32> to vector<1x24x256xf32>
    %31 = arith.mulf %0, %30 : vector<1x24x256xf32>
    %c0_15 = arith.constant 0 : index
    %c0_16 = arith.constant 0 : index
    %c0_17 = arith.constant 0 : index
    %32 = vector.load %arg6[%c0_15, %c0_16, %c0_17] : memref<1x24x256xf32, #tpu.memory_space<vmem>>, vector<1x24x256xf32>
    tpu.vector_store %arg6[%c0_15, %c0_16, %c0_17], %31 {strides = array<i32>} : memref<1x24x256xf32, #tpu.memory_space<vmem>>, vector<1x24x256xf32>,
    return
  }
  func.func @transform_0(%arg0: i32) -> (i32, i32, i32) {
    %c0_i32 = arith.constant 0 : i32
    %c0_i32_0 = arith.constant 0 : i32
    %c0_i32_1 = arith.constant 0 : i32
    return %arg0, %c0_i32, %c0_i32_0 : i32, i32, i32
  }
  func.func @transform_1(%arg0: i32) -> (i32, i32) {
    %c0_i32 = arith.constant 0 : i32
    %c0_i32_0 = arith.constant 0 : i32
    %c0_i32_1 = arith.constant 0 : i32
    return %c0_i32, %c0_i32_0 : i32, i32
  }
  func.func @transform_2(%arg0: i32) -> (i32, i32) {
    %c0_i32 = arith.constant 0 : i32
    %c0_i32_0 = arith.constant 0 : i32
    %c0_i32_1 = arith.constant 0 : i32
    return %c0_i32, %c0_i32_0 : i32, i32
  }
  func.func @transform_3(%arg0: i32) -> (i32, i32) {
    %c0_i32 = arith.constant 0 : i32
    %c0_i32_0 = arith.constant 0 : i32
    %c0_i32_1 = arith.constant 0 : i32
    return %c0_i32, %c0_i32_0 : i32, i32
  }
  func.func @transform_4(%arg0: i32) -> (i32, i32) {
    %c0_i32 = arith.constant 0 : i32
    %c0_i32_0 = arith.constant 0 : i32
    %c0_i32_1 = arith.constant 0 : i32
    return %c0_i32, %c0_i32_0 : i32, i32
  }
  func.func @transform_5(%arg0: i32) -> (i32, i32, i32) {
    %c0_i32 = arith.constant 0 : i32
    %c0_i32_0 = arith.constant 0 : i32
    %c0_i32_1 = arith.constant 0 : i32
    return %arg0, %c0_i32, %c0_i32_0 : i32, i32, i32
  }
}

</mosaic_0001>

<bundles_post_ra>
// kernel: tpu_custom_call.1
= control target key start
LH: loop header
LB: loop body
LE: loop exit
PB: predicated region body
PF: predicated region fallthrough
CT: control target
= control target key end

     0   :  { %10 = vsyncpa [#allocation3], 0  ;;  %s874_s0 = inlined_call_operand.hbm [shape: f32[2,24,256], index: 0, kind: input, shape index: {}]   ;;  %s875_s1 = inlined_call_operand.vmem [shape: f32[24,2], index: 1, kind: input, shape index: {}]   ;;  %s876_s2 = inlined_call_operand.vmem [shape: f32[1,2], index: 2, kind: input, shape index: {}]   ;;  %s877_s3 = inlined_call_operand.vmem [shape: f32[24,2], index: 3, kind: input, shape index: {}]   ;;  %s878_s4 = inlined_call_operand.vmem [shape: f32[24,1], index: 4, kind: input, shape index: {}]   ;;  %s879_s5 = inlined_call_operand.hbm [shape: f32[2,24,256], index: 5, kind: output, shape index: {}]  }
   0x1   :  { %12 = vsyncpa [#allocation3 + $0x1], 0 }
   0x2   :  { %13 = vsyncpa [#allocation4], 0 }
   0x3   :  { %15 = vsyncpa [#allocation4 + $0x1], 0  ;;  %s654_s18 = smov 0   ;;  %s656_s19 = smov 0  }
   0x4   :  { %s658_s20 = smov 0   ;;  %s660_s21 = smov 0  }
   0x5 LB: > { %s675_s22 = sadd.s32 4294967295, %s615_s21   ;;  %s439_s23 = sadd.s32 4294967294, %s615_s21   ;;  %s615_s21 = sphi %s660_s21, %s891_s21   ;;  %s611_s20 = sphi %s658_s20, %s890_s20   ;;  %s607_s19 = sphi %s656_s19, %s889_s19   ;;  %s603_s18 = sphi %s654_s18, %s888_s18  }
   0x6   : > { %s679_s24 = sadd.s32 1, %s615_s21   ;;  %s28_s25 = sadd.s32 1, %s611_s20 }
   0x7   : > { %s25_s26 = ssub.s32 %s615_s21, %s679_s24  ;;  %p35_p0 = scmp.ne.s32.totalorder %s611_s20, %s607_s19 }
   0x8   : > { %p26_p1 = scmp.eq.s32.totalorder %s25_s26, 0  ;;  %p36_p2 = scmp.eq.s32.totalorder %s615_s21, 0 }
   0x9   : > { %p41_p3 = scmp.ne.s32.totalorder %s607_s19, %s603_s18  ;;  %p42_p4 = scmp.eq.s32.totalorder %s675_s22, 0 }
   0xa   : > { %s691_s27 = scalar_select %p26_p1, %s611_s20, %s28_s25  }
   0xb   : > { %p37_p5 = por %p36_p2, %p35_p0  ;;  %p693_p6 = por %p42_p4, %p41_p3 }
   0xc   : > { %p149_p7 = scmp.eq.s32.totalorder %s675_s22, 1  ;;  %p155_p8 = scmp.eq.s32.totalorder %s439_s23, 1 }
   0xd   : > { %p466_p10 = scmp.lt.s32.totalorder %s615_s21, 2  ;;  %s187_s6 = sand.u32 1, %s611_s20  }
   0xe   : > { %p700_p11 = por %p149_p7, %p35_p0  ;;  %p704_p12 = por %p155_p8, %p41_p3 }
   0xf   : > { %s451_s7 = smul.u32 768, %s615_s21  ;;  %p715_p13 = pnand %p466_p10, %p37_p5 }
  0x10   : > { %s882_s29 = scalar_select %p700_p11, 1, 0 }
  0x11   : > { %s883_s30 = scalar_select %p704_p12, 1, 0 }
  0x12   : > { %s450_s8 = smul.u32 48, %s187_s6  ;;  %s713_s11 = scalar_lea.hbm %s874_s0, %s451_s7 }
  0x13   : > { %s721_s15 = scalar_lea.sflag [#allocation3], %s187_s6  ;;  %s519_s16 = scalar_lea.hbm %s713_s11, 768 }
  0x14   : > { %s191_s13 = scalar_lea.vmem [#allocation2], %s450_s8  ;;  %p520_p0 = scmp.ne.s32.totalorder %s713_s11, %s519_s16 }
  0x15   : > { %s198_s14 = sshll.u32 %s191_s13, 4  ;;  %p521_p1 = pneg %p715_p13  ;;  %s719_s14 = int_to_ptr.vmem [resolvable:$true] %s198_s14 }
  0x16   : > { %s524_s25 = scalar_lea.hbm %s874_s0, 1536  ;;  %p525_p4 = scmp.lt.u32.totalorder %s713_s11, %s874_s0 }
  0x17   : > { %p522_p2 = pnand %p521_p1, %p520_p0  ;;  %p526_p5 = scmp.lt.u32.totalorder %s524_s25, %s519_s16 }
  0x18   : > { %p528_p8 = scmp.lt.u32.totalorder %s519_s16, %s713_s11 }
  0x19   : > { %p523_p3 = pneg %p522_p2  ;;  %p527_p7 = por %p526_p5, %p525_p4 }
  0x1b   : > { %p529_p10 = por %p528_p8, %p527_p7 }
  0x1d   : > { %p530_p9 = pnand %p529_p10, %p523_p3 }
  0x1f   : > { %533 = shalt.err (!%p530_p9)
}
  0x20   : > { %s534_s6 = scalar_lea.vmem %s719_s14, 768  ;;  %s617_s8 = smov [#allocation2]  }
  0x21   : > { %p535_p0 = scmp.ne.s32.totalorder %s719_s14, %s534_s6  ;;  %s539_s9 = sshll.u32 %s617_s8, 4  ;;  %s540_s9 = int_to_ptr.vmem [resolvable:$false] %s539_s9 }
  0x22   : > { %s541_s10 = scalar_lea.vmem %s540_s9, 1536  ;;  %p542_p11 = scmp.lt.s32.totalorder %s719_s14, %s540_s9 }
  0x23   : > { %p537_p2 = pnand %p535_p0, %p521_p1  ;;  %p543_p4 = scmp.lt.s32.totalorder %s541_s10, %s534_s6 }
  0x25   : > { %p538_p12 = pneg %p537_p2  ;;  %p544_p5 = por %p543_p4, %p542_p11 }
  0x27   : > { %p545_p7 = pnand %p544_p5, %p538_p12 }
  0x29   : > { %548 = shalt.err (!%p545_p7)
}
  0x2a   : > { %s618_s13 = smov 256   ;;  %s619_s16 = smov 16  }
  0x2b   : > { %461 = dma.hbm_to_vmem [thread:$0]  (!%p715_p13), %s713_s11, 768, %s719_s14, %s721_s15, %s618_s13, %s618_s13, %s619_s16  }
  0x2c   : > { %p443_p9 = scmp.ge.s32.totalorder %s615_s21, 1  ;;  %p206_p1 = scmp.lt.s32.totalorder %s615_s21, 3 }
  0x2e   : > { %p207_p3 = pnand %p443_p9, %p206_p1 }
  0x2f   : > { %s752_s17 = sand.u32 (!%p207_p3), 1, %s607_s19  }
  0x30   : > { %210 = sbr.rel (%p207_p3) target bundleno = 554 (0x22a), region = 40  ;;  %s213_s25 = scalar_lea.sflag (!%p207_p3), [#allocation3], %s752_s17 }
  0x31   : > { %s452_s23 = smul.u32 (!%p207_p3), 48, %s752_s17 }
  0x33   : > { %s216_s26 = scalar_lea.vmem (!%p207_p3), [#allocation2], %s452_s23 }
  0x37   : > { %594 = dma.done.wait (%p693_p6), %s213_s25, 768  }
  0x38   : > { %596 = vsyncadd (%p693_p6), %s213_s25, 4294966528  ;;  %v762_v0 = vld [vmem:[%s216_s26] sm:$0xff]  ;;  %v764_v1 = vld [vmem:[%s216_s26 + $0x8] sm:$0xff]  ;;  %vm267_vm0 = vcmask 15360   ;;  %v285_v29 = vlaneseq  ;;  %v620_v48 = vmov 0   ;;  %s242_s6 = scalar_lea.vmem [#allocation5], %s452_s23 }
  0x39   : > { %v766_v2 = vld [vmem:[%s216_s26 + $0x10] sm:$0xff]  ;;  %v249_v3 = vadd.f32 %v764_v1, %v762_v0  ;;  %v770_v4 = vld [vmem:[%s216_s26 + $0x18] sm:$0xff]  ;;  %v772_v5 = vld [vmem:[%s216_s26 + $0x20] sm:$0xff]  ;;  %506 = vset.pattern.permute.xlu1 %v620_v48  ;;  %505 = vset.pattern.permute.xlu0 %v620_v48  ;;  %s366_s8 = sshll.u32 %s242_s6, 4  ;;  %s453_s9 = smul.u32 768, %s675_s22  ;;  %s823_s8 = int_to_ptr.vmem [resolvable:$true] %s366_s8 }
  0x3a   : > { %v774_v6 = vld [vmem:[%s216_s26 + $0x28] sm:$0xff]  ;;  %v252_v8 = vadd.f32 %v770_v4, %v766_v2  ;;  %v261_v12 = vld [vmem:[%s875_s1] sm:$0xff]  ;;  %v263_v13 = vld [vmem:[%s875_s1 + $0x10] sm:$0xff]  ;;  %v286_v32 = vshrl.u32 %v285_v29, 7  ;;  %s353_s13 = scalar_lea.sflag [#allocation4], %s752_s17  ;;  %s549_s16 = scalar_lea.vmem %s823_s8, 768 }
  0x3b   : > { %v255_v7 = vadd.f32 %v774_v6, %v772_v5  ;;  %250 = vadd.xlane.f32.xlu0 %v249_v3  ;;  %v262_v15 = vld [vmem:[%s875_s1 + $0x8] sm:$0xff]  ;;  %v279_v33 = vld [vmem:[%s876_s2] sm:$0x1]  ;;  %v284_v41 = vld [vmem:[%s877_s3 + $0x10] sm:$0xff]  ;;  %s830_s10 = scalar_lea.hbm %s879_s5, %s453_s9  ;;  %p550_p6 = scmp.ne.s32.totalorder %s823_s8, %s549_s16 }
  0x3c   : > { %v287_v36 = vsub.s32 0, %v286_v32  ;;  %v283_v38 = vld [vmem:[%s877_s3 + $0x8] sm:$0xff]  ;;  %v282_v39 = vld [vmem:[%s877_s3] sm:$0xff]  ;;  %v303_v55 = vld [vmem:[%s878_s4 + $0x10] sm:$0xff]  ;;  %p885_p11 = scmp.ne.s32.totalorder %s882_s29, 0  ;;  %s621_s25 = smov [#allocation5]  }
  0x3d   : > { %256 = vadd.xlane.f32.xlu1 %v255_v7  ;;  %v302_v49 = vld [vmem:[%s878_s4 + $0x8] sm:$0xff]  ;;  %v301_v50 = vld [vmem:[%s878_s4] sm:$0xff]  ;;  %s553_s26 = sshll.u32 %s621_s25, 4  ;;  %s554_s26 = int_to_ptr.vmem [resolvable:$false] %s553_s26 }
  0x3e   : > { %p551_p12 = pnand %p550_p6, %p885_p11  ;;  %s555_s28 = scalar_lea.vmem %s554_s26, 1536 }
  0x3f   : > { %253 = vadd.xlane.f32.xlu0 %v252_v8  ;;  %p556_p8 = scmp.lt.s32.totalorder %s823_s8, %s554_s26  ;;  %p557_p10 = scmp.lt.s32.totalorder %s555_s28, %s549_s16 }
  0x40   : > { %p552_p13 = pneg %p551_p12 }
  0x41   : > { %p558_p0 = por %p557_p10, %p556_p8 }
  0x43   : > { %p559_p2 = pnand %p558_p0, %p552_p13 }
  0xc8   : > { %v251_v9 = vpop.xlane.xlu0 %250 }
  0xc9   : > { %v258_v10 = vmul.f32 0.00390625, %v251_v9 }
  0xca   : > { %v257_v11 = vpop.xlane.xlu1 %256 }
  0xcb   : > { %v260_v14 = vmul.f32 0.00390625, %v257_v11  ;;  %v264_v17 = vmul.f32 %v261_v12, %v258_v10 }
  0xcc   : > { %v254_v16 = vpop.xlane.xlu0 %253 }
  0xcd   : > { %v259_v18 = vmul.f32 0.00390625, %v254_v16  ;;  %v266_v19 = vmul.f32 %v263_v13, %v260_v14  ;;  %v268_v21 = vsel %vm267_vm0, %v264_v17, 0.0 }
  0xcf   : > { %v265_v20 = vmul.f32 %v262_v15, %v259_v18  ;;  %v271_v23 = vsel %vm267_vm0, %v266_v19, 0.0 }
  0xd1   : > { %v269_v22 = vsel %vm267_vm0, %v265_v20, 0.0 }
  0xd2   : > { %v270_v24 = vadd.f32 %v269_v22, %v268_v21 }
  0xd4   : > { %v272_v25 = vadd.f32 %v271_v23, %v270_v24 }
  0xd6   : > { %v273_v26 = vrot.slane %v272_v25, 4 }
  0xd8   : > { %v274_v27 = vadd.f32 %v273_v26, %v272_v25 }
  0xda   : > { %v275_v28 = vrot.slane %v274_v27, 2 }
  0xdc   : > { %v276_v30 = vadd.f32 %v275_v28, %v274_v27 }
  0xde   : > { %v277_v31 = vrot.slane %v276_v30, 1 }
  0xe0   : > { %v278_v34 = vadd.f32 %v277_v31, %v276_v30 }
  0xe2   : > { %v280_v35 = vadd.f32 %v279_v33, %v278_v34 }
  0xe4   : > { %v281_v37 = vmax.f32 %v280_v35, 0.0 }
  0xe6   : > { %v288_v40 = vrot.slane %v281_v37, %v287_v36 }
  0xe8   : > { %v290_v42 = vmul.f32 %v288_v40, %v283_v38  ;;  %v289_v43 = vmul.f32 %v288_v40, %v282_v39  ;;  %v291_v46 = vmul.f32 %v288_v40, %v284_v41 }
  0xea   : > { %v295_v44 = vsel %vm267_vm0, %v290_v42, 0.0  ;;  %v292_v45 = vsel %vm267_vm0, %v289_v43, 0.0  ;;  %v298_v47 = vsel %vm267_vm0, %v291_v46, 0.0 }
  0xeb   : > { %296 = vadd.xlane.f32.xlu0 %v295_v44  ;;  %293 = vadd.xlane.f32.xlu1 %v292_v45 }
  0xef   : > { %299 = vadd.xlane.f32.xlu1 %v298_v47 }
 0x178   : > { %v297_v51 = vpop.xlane.xlu0 %296  ;;  %v294_v52 = vpop.xlane.xlu1 %293 }
 0x179   : > { %v305_v53 = vadd.f32 %v302_v49, %v297_v51  ;;  %v304_v54 = vadd.f32 %v301_v50, %v294_v52 }
 0x17b   : > { %v445_v56 = vmul.f32 -1.442695, %v305_v53  ;;  %v444_v57 = vmul.f32 -1.442695, %v304_v54 }
 0x17c   : > { %v300_v58 = vpop.xlane.xlu1 %299 }
 0x17d   : > { %507 = vpow2.f32 %v445_v56  ;;  %v306_v59 = vadd.f32 %v303_v55, %v300_v58 }
 0x17e   : > { %509 = vpow2.f32 %v444_v57 }
 0x17f   : > { %v446_v60 = vmul.f32 -1.442695, %v306_v59 }
 0x181   : > { %511 = vpow2.f32 %v446_v60 }
 0x187   : > { %v508_v61 = vpop.eup %507 }
 0x188   : > { %v510_v62 = vpop.eup %509  ;;  %v317_v63 = vadd.f32 1.0, %v508_v61 }
 0x189   : > { %v316_v3 = vadd.f32 1.0, %v510_v62 }
 0x18a   : > { %513 = vrcp.f32 %v317_v63 }
 0x18b   : > { %v512_v7 = vpop.eup %511  ;;  %515 = vrcp.f32 %v316_v3 }
 0x18c   : > { %v318_v8 = vadd.f32 1.0, %v512_v7 }
 0x18e   : > { %517 = vrcp.f32 %v318_v8 }
 0x194   : > { %v514_v9 = vpop.eup %513 }
 0x195   : > { %v516_v10 = vpop.eup %515  ;;  %332 = vperm.xlu1 %506, %v514_v9  }
 0x196   : > { %327 = vperm.xlu0 %505, %v516_v10  }
 0x198   : > { %v518_v11 = vpop.eup %517 }
 0x199   : > { %337 = vperm.xlu1 %506, %v518_v11  }
 0x214   : > { %v333_v12 = vpop.permute.xlu1 %332 }
 0x215   : > { %v328_v13 = vpop.permute.xlu0 %327  ;;  %v342_v14 = vmul.f32 %v333_v12, %v766_v2  ;;  %v343_v15 = vmul.f32 %v333_v12, %v770_v4 }
 0x216   : > { %v340_v16 = vmul.f32 %v328_v13, %v762_v0  ;;  %v341_v17 = vmul.f32 %v328_v13, %v764_v1 }
 0x217   : > { %348 = vst [vmem:[%s242_s6 + $0x10] sm:$0xff] %v342_v14  ;;  %349 = vst [vmem:[%s242_s6 + $0x18] sm:$0xff] %v343_v15 }
 0x218   : > { %346 = vst [vmem:[%s242_s6] sm:$0xff] %v340_v16  ;;  %347 = vst [vmem:[%s242_s6 + $0x8] sm:$0xff] %v341_v17  ;;  %v338_v18 = vpop.permute.xlu1 %337 }
 0x219   : > { %v344_v2 = vmul.f32 %v338_v18, %v772_v5  ;;  %v345_v4 = vmul.f32 %v338_v18, %v774_v6 }
 0x21b   : > { %350 = vst [vmem:[%s242_s6 + $0x20] sm:$0xff] %v344_v2  ;;  %351 = vst [vmem:[%s242_s6 + $0x28] sm:$0xff] %v345_v4 }
 0x21c   : > { %562 = shalt.err (!%p559_p2)
}
 0x21d   : > { %s563_s11 = scalar_lea.hbm %s830_s10, 768  ;;  %s567_s15 = scalar_lea.hbm %s879_s5, 1536 }
 0x21e   : > { %p564_p4 = scmp.ne.s32.totalorder %s830_s10, %s563_s11  ;;  %p568_p9 = scmp.lt.u32.totalorder %s830_s10, %s879_s5 }
 0x21f   : > { %p569_p1 = scmp.lt.u32.totalorder %s567_s15, %s563_s11  ;;  %p571_p6 = scmp.lt.u32.totalorder %s563_s11, %s830_s10 }
 0x220   : > { %p565_p5 = pnand %p564_p4, %p885_p11 }
 0x221   : > { %p570_p3 = por %p569_p1, %p568_p9 }
 0x222   : > { %p566_p7 = pneg %p565_p5 }
 0x223   : > { %p572_p12 = por %p571_p6, %p570_p3 }
 0x225   : > { %p573_p13 = pnand %p572_p12, %p566_p7 }
 0x227   : > { %576 = shalt.err (!%p573_p13)
}
 0x228   : > { %s622_s9 = smov 256   ;;  %s623_s22 = smov 16  }
 0x229   : > { %456 = dma.vmem_to_hbm [thread:$0]  (%p885_p11), %s823_s8, 768, %s830_s10, %s353_s13, %s622_s9, %s622_s9, %s623_s22  }
 0x22a PF: > { %s381_s23 = sand.u32 1, %s603_s18   ;;  %p886_p8 = scmp.ne.s32.totalorder %s883_s30, 0 }
 0x22b   : > { %p887_p10 = scmp.ge.s32.totalorder %s615_s21, 2  ;;  %s382_s16 = scalar_lea.sflag [#allocation4], %s381_s23 }
 0x22d   : > { %p463_p0 = pnand %p887_p10, %p886_p8 }
 0x22f   : > { %598 = dma.done.wait (!%p463_p0), %s382_s16, 768  }
 0x230   : > { %600 = vsyncadd (!%p463_p0), %s382_s16, 4294966528  ;;  %p18_p2 = scmp.ge.s32.totalorder %s679_s24, 4   ;;  %s888_s18 = smov %s607_s19 }
 0x231   : > { %s889_s19 = smov %s611_s20  ;;  %s890_s20 = smov %s691_s27 }
 0x232   : > { %s891_s21 = smov %s679_s24  ;;  %20 = sbr.rel (!%p18_p2) target bundleno = 5 (0x5), region = 85 }
 0x239   :  { %387 = vsyncpa [#allocation3], 1 }
 0x23a   :  { %389 = vsyncpa [#allocation3 + $0x1], 1 }
 0x23b   :  { %390 = vsyncpa [#allocation4], 1 }
 0x23c   :  { %392 = vsyncpa [#allocation4 + $0x1], 1 }

</bundles_post_ra>
